<compile_context>
chip_gen: v7x
topology: tpu7x:2x2x1
jax: 0.10.0
libtpu: 0.0.40
codegen_flags: <defaults>
</compile_context>

<pallas_src>
import jax
import jax.numpy as jnp
from jax.experimental import pallas as pl
from jax.experimental.pallas import tpu as pltpu

NEG_SLOPE = 0.01  # torch.nn.LeakyReLU default negative_slope


def _round_up(x, m):
    return ((x + m - 1) // m) * m


def _pad_to(a, shape):
    pads = [(0, t - s) for s, t in zip(a.shape, shape)]
    return jnp.pad(a, pads)


def _leaky_relu(x):
    return jnp.where(x >= 0, x, NEG_SLOPE * x)


def _make_kernel(has_skip, training, out_pad):
    """Kernel factory.

    Argument order:
      x_tile,
      [w1cat, b1cat, w2, b2, ws2, bs2, ws3, bs3]   (has_skip)
      [w1,    b1,    w2, b2]                        (no skip)
      [mask1, mask2]                                (training only)
      out_tile
    """

    def kernel(*refs):
        idx = 0
        x_ref = refs[idx]; idx += 1
        if has_skip:
            w1cat_ref, b1cat_ref = refs[idx], refs[idx + 1]; idx += 2
            w2_ref, b2_ref = refs[idx], refs[idx + 1]; idx += 2
            ws2_ref, bs2_ref = refs[idx], refs[idx + 1]; idx += 2
            ws3_ref, bs3_ref = refs[idx], refs[idx + 1]; idx += 2
        else:
            w1_ref, b1_ref = refs[idx], refs[idx + 1]; idx += 2
            w2_ref, b2_ref = refs[idx], refs[idx + 1]; idx += 2
        if training:
            m1_ref, m2_ref = refs[idx], refs[idx + 1]; idx += 2
        o_ref = refs[idx]

        x = x_ref[...]  # native dtype, MXU accumulates in f32

        # ---- first layer(s): fused (linear1 | skip-linear1) on one wide matmul ----
        if has_skip:
            y = jnp.dot(x, w1cat_ref[...], preferred_element_type=jnp.float32)
            y = _leaky_relu(y + b1cat_ref[...].astype(jnp.float32))
            out = y[:, :out_pad]       # main branch (128-aligned slice)
            hs = y[:, out_pad:]        # skip branch hidden
        else:
            out = jnp.dot(x, w1_ref[...], preferred_element_type=jnp.float32)
            out = _leaky_relu(out + b1_ref[...].astype(jnp.float32))

        # ---- dropout1 (main branch only, matches torch) ----
        if training:
            out = out * m1_ref[...].astype(jnp.float32)

        # ---- linear2 -> leaky_relu ----
        out = jnp.dot(out.astype(w2_ref.dtype), w2_ref[...],
                      preferred_element_type=jnp.float32)
        out = _leaky_relu(out + b2_ref[...].astype(jnp.float32))

        # ---- skip branch remainder / identity ----
        if has_skip:
            hs = jnp.dot(hs.astype(ws2_ref.dtype), ws2_ref[...],
                         preferred_element_type=jnp.float32)
            hs = _leaky_relu(hs + bs2_ref[...].astype(jnp.float32))
            identity = jnp.dot(hs.astype(ws3_ref.dtype), ws3_ref[...],
                               preferred_element_type=jnp.float32)
            identity = identity + bs3_ref[...].astype(jnp.float32)
        else:
            identity = x.astype(jnp.float32)

        out = out + identity

        # ---- dropout2 (after residual add, matches torch) ----
        if training:
            out = out * m2_ref[...].astype(jnp.float32)

        o_ref[...] = out.astype(o_ref.dtype)

    return kernel


def decode_block_forward(x, params, *, dropout_p=0.1, training=False, seed=0):
    B, in_dim = x.shape
    out_dim = params["w1"].shape[1]
    has_skip = "ws1" in params
    hid = params["ws1"].shape[1] if has_skip else 0

    # lane-dense feature padding (multiples of 128)
    in_pad = _round_up(in_dim, 128)
    out_pad = _round_up(out_dim, 128)
    hid_pad = _round_up(hid, 128) if has_skip else 0

    # batch tiling: big tiles (up to 256 rows), padded to a whole number of tiles
    sub = {4: 8, 2: 16, 1: 32}.get(x.dtype.itemsize, 8)
    TB = min(256, _round_up(B, sub))
    B_pad = _round_up(B, TB)
    grid = (B_pad // TB,)

    x_p = _pad_to(x, (B_pad, in_pad))

    inputs = [x_p]
    in_specs = [pl.BlockSpec((TB, in_pad), lambda i: (i, 0))]

    def add_full(arr):
        inputs.append(arr)
        in_specs.append(pl.BlockSpec(arr.shape, lambda i: (0, 0)))

    w2 = _pad_to(params["w2"], (out_pad, out_pad))
    b2 = _pad_to(params["b2"], (1, out_pad))

    if has_skip:
        w1 = _pad_to(params["w1"], (in_pad, out_pad))
        b1 = _pad_to(params["b1"], (1, out_pad))
        ws1 = _pad_to(params["ws1"], (in_pad, hid_pad))
        bs1 = _pad_to(params["bs1"], (1, hid_pad))
        # fuse linear1 + skip-linear1 (shared contraction dim) into one wide matmul
        w1cat = jnp.concatenate([w1, ws1], axis=1)
        b1cat = jnp.concatenate([b1, bs1], axis=1)
        ws2 = _pad_to(params["ws2"], (hid_pad, hid_pad))
        bs2 = _pad_to(params["bs2"], (1, hid_pad))
        ws3 = _pad_to(params["ws3"], (hid_pad, out_pad))
        bs3 = _pad_to(params["bs3"], (1, out_pad))
        for a in (w1cat, b1cat, w2, b2, ws2, bs2, ws3, bs3):
            add_full(a)
    else:
        w1 = _pad_to(params["w1"], (in_pad, out_pad))
        b1 = _pad_to(params["b1"], (1, out_pad))
        for a in (w1, b1, w2, b2):
            add_full(a)

    if training:
        # Host-side Bernoulli keep-masks, pre-scaled by 1/(1-p); identical dropout
        # semantics to torch.nn.Dropout (different RNG stream, deterministic by seed).
        keep = 1.0 - float(dropout_p)
        k1, k2 = jax.random.split(jax.random.PRNGKey(seed))
        m1 = jax.random.bernoulli(k1, keep, (B_pad, out_pad)).astype(jnp.float32) * (1.0 / keep)
        m2 = jax.random.bernoulli(k2, keep, (B_pad, out_pad)).astype(jnp.float32) * (1.0 / keep)
        inputs += [m1, m2]
        in_specs += [pl.BlockSpec((TB, out_pad), lambda i: (i, 0)),
                     pl.BlockSpec((TB, out_pad), lambda i: (i, 0))]

    kernel = _make_kernel(has_skip, training, out_pad)

    flops = 2 * B_pad * (in_pad * (out_pad + hid_pad) + out_pad * out_pad)
    if has_skip:
        flops += 2 * B_pad * (hid_pad * hid_pad + hid_pad * out_pad)
    bytes_accessed = sum(int(a.size) * a.dtype.itemsize for a in inputs)
    bytes_accessed += B_pad * out_pad * x.dtype.itemsize

    out = pl.pallas_call(
        kernel,
        out_shape=jax.ShapeDtypeStruct((B_pad, out_pad), x.dtype),
        grid=grid,
        in_specs=in_specs,
        out_specs=pl.BlockSpec((TB, out_pad), lambda i: (i, 0)),
        compiler_params=pltpu.CompilerParams(
            dimension_semantics=("parallel",)),  # shards batch tiles across TCs on v7x
        cost_estimate=pl.CostEstimate(flops=int(flops), transcendentals=0,
                                      bytes_accessed=int(bytes_accessed)),
    )(*inputs)

    return out[:B, :out_dim]


def init_params(key, in_dim, out_dim):
    """Deterministic init mimicking torch.nn.Linear default (U[-1/sqrt(fan_in), +])."""
    def linear(k, fan_in, fan_out):
        k1, k2 = jax.random.split(k)
        bound = 1.0 / float(fan_in) ** 0.5
        w = jax.random.uniform(k1, (fan_in, fan_out), jnp.float32, -bound, bound)
        b = jax.random.uniform(k2, (1, fan_out), jnp.float32, -bound, bound)
        return w, b

    keys = jax.random.split(key, 5)
    params = {}
    params["w1"], params["b1"] = linear(keys[0], in_dim, out_dim)
    params["w2"], params["b2"] = linear(keys[1], out_dim, out_dim)
    if in_dim != out_dim:
        hid = in_dim // 2
        params["ws1"], params["bs1"] = linear(keys[2], in_dim, hid)
        params["ws2"], params["bs2"] = linear(keys[3], hid, hid)
        params["ws3"], params["bs3"] = linear(keys[4], hid, out_dim)
    return params


def decode_block_ref(x, params):
    """Pure-JAX eval-mode reference for correctness checking."""
    def lrelu(v):
        return jnp.where(v >= 0, v, NEG_SLOPE * v)

    out = lrelu(x @ params["w1"] + params["b1"])
    out = lrelu(out @ params["w2"] + params["b2"])
    if "ws1" in params:
        h = lrelu(x @ params["ws1"] + params["bs1"])
        h = lrelu(h @ params["ws2"] + params["bs2"])
        identity = h @ params["ws3"] + params["bs3"]
    else:
        identity = x
    return out + identity


if __name__ == "__main__":
    key = jax.random.PRNGKey(0)
    k_x, k_p, k_x2, k_p2 = jax.random.split(key, 4)

    # case 1: in_dim != out_dim -> 3-Linear skip MLP path
    B, in_dim, out_dim = 16, 32, 16
    x = jax.random.normal(k_x, (B, in_dim), dtype=jnp.float32)
    params = init_params(k_p, in_dim, out_dim)

    y_eval = jax.block_until_ready(decode_block_forward(x, params, training=False))
    y_ref = decode_block_ref(x, params)
    assert y_eval.shape == (B, out_dim)
    assert jnp.allclose(y_eval, y_ref, atol=1e-4, rtol=1e-4)

    # case 2: in_dim == out_dim -> identity skip
    B2, dim2 = 8, 32
    x2 = jax.random.normal(k_x2, (B2, dim2), dtype=jnp.float32)
    params2 = init_params(k_p2, dim2, dim2)
    y2 = jax.block_until_ready(decode_block_forward(x2, params2, training=False))
    y2_ref = decode_block_ref(x2, params2)
    assert y2.shape == (B2, dim2)
    assert jnp.allclose(y2, y2_ref, atol=1e-4, rtol=1e-4)

    # training mode: dropout masks generated host-side, applied inside the kernel
    y_train = jax.block_until_ready(
        decode_block_forward(x, params, dropout_p=0.1, training=True, seed=1234))
    assert y_train.shape == (B, out_dim)
    assert bool(jnp.all(jnp.isfinite(y_train)))

    print("KERNEL_OK")
</pallas_src>

<mosaic_0001>
module attributes {stable_mosaic.version = 11 : i64} {
  func.func @kernel(%arg0: i32, %arg1: memref<16x128xf32, #tpu.memory_space<vmem>>, %arg2: memref<128x256xf32, #tpu.memory_space<vmem>>, %arg3: memref<1x256xf32, #tpu.memory_space<vmem>>, %arg4: memref<128x128xf32, #tpu.memory_space<vmem>>, %arg5: memref<1x128xf32, #tpu.memory_space<vmem>>, %arg6: memref<128x128xf32, #tpu.memory_space<vmem>>, %arg7: memref<1x128xf32, #tpu.memory_space<vmem>>, %arg8: memref<128x128xf32, #tpu.memory_space<vmem>>, %arg9: memref<1x128xf32, #tpu.memory_space<vmem>>, %arg10: memref<16x128xf32, #tpu.memory_space<vmem>>) attributes {dimension_semantics = [#tpu.dimension_semantics<parallel>], iteration_bounds = array<i64: 1>, scalar_prefetch = 0 : i64, scratch_operands = 0 : i64, tpu.core_type = #tpu.core_type<tc>, window_params = [{transform_indices = @transform_0, window_bounds = array<i64: 16, 128>}, {pipeline_mode = #tpu.pipeline_mode<synchronous>, transform_indices = @transform_1, window_bounds = array<i64: 128, 256>}, {pipeline_mode = #tpu.pipeline_mode<synchronous>, transform_indices = @transform_2, window_bounds = array<i64: 1, 256>}, {pipeline_mode = #tpu.pipeline_mode<synchronous>, transform_indices = @transform_3, window_bounds = array<i64: 128, 128>}, {pipeline_mode = #tpu.pipeline_mode<synchronous>, transform_indices = @transform_4, window_bounds = array<i64: 1, 128>}, {pipeline_mode = #tpu.pipeline_mode<synchronous>, transform_indices = @transform_5, window_bounds = array<i64: 128, 128>}, {pipeline_mode = #tpu.pipeline_mode<synchronous>, transform_indices = @transform_6, window_bounds = array<i64: 1, 128>}, {pipeline_mode = #tpu.pipeline_mode<synchronous>, transform_indices = @transform_7, window_bounds = array<i64: 128, 128>}, {pipeline_mode = #tpu.pipeline_mode<synchronous>, transform_indices = @transform_8, window_bounds = array<i64: 1, 128>}, {transform_indices = @transform_9, window_bounds = array<i64: 16, 128>}]} {
    %c0 = arith.constant 0 : index
    %c0_0 = arith.constant 0 : index
    %0 = vector.load %arg1[%c0, %c0_0] : memref<16x128xf32, #tpu.memory_space<vmem>>, vector<16x128xf32>
    %c0_1 = arith.constant 0 : index
    %c0_2 = arith.constant 0 : index
    %1 = vector.load %arg2[%c0_1, %c0_2] : memref<128x256xf32, #tpu.memory_space<vmem>>, vector<128x256xf32>
    %cst = arith.constant dense<0.000000e+00> : vector<16x256xf32>
    %2 = tpu.matmul %0, %1, %cst {dimension_numbers = #tpu.dot_dimension_numbers<[1], [0], [0], [1], [0, 0, 1, 1], [], []>} : vector<16x128xf32>, vector<128x256xf32>, vector<16x256xf32> -> vector<16x256xf32>
    %c0_3 = arith.constant 0 : index
    %c0_4 = arith.constant 0 : index
    %3 = vector.load %arg3[%c0_3, %c0_4] : memref<1x256xf32, #tpu.memory_space<vmem>>, vector<1x256xf32>
    %4 = vector.broadcast %3 : vector<1x256xf32> to vector<16x256xf32>
    %5 = arith.addf %2, %4 : vector<16x256xf32>
    %cst_5 = arith.constant 0.000000e+00 : f32
    %6 = vector.broadcast %cst_5 : f32 to vector<16x256xf32>
    %7 = arith.cmpf oge, %5, %6 : vector<16x256xf32>
    %cst_6 = arith.constant 0.00999999977 : f32
    %8 = vector.broadcast %cst_6 : f32 to vector<16x256xf32>
    %9 = arith.mulf %8, %5 : vector<16x256xf32>
    %10 = arith.select %7, %5, %9 : vector<16x256xi1>, vector<16x256xf32>
    %11 = vector.extract_strided_slice %10 {offsets = [0, 0], sizes = [16, 128], strides = [1, 1]} : vector<16x256xf32> to vector<16x128xf32>
    %12 = vector.extract_strided_slice %10 {offsets = [0, 128], sizes = [16, 128], strides = [1, 1]} : vector<16x256xf32> to vector<16x128xf32>
    %c0_7 = arith.constant 0 : index
    %c0_8 = arith.constant 0 : index
    %13 = vector.load %arg4[%c0_7, %c0_8] : memref<128x128xf32, #tpu.memory_space<vmem>>, vector<128x128xf32>
    %cst_9 = arith.constant dense<0.000000e+00> : vector<16x128xf32>
    %14 = tpu.matmul %11, %13, %cst_9 {dimension_numbers = #tpu.dot_dimension_numbers<[1], [0], [0], [1], [0, 0, 1, 1], [], []>} : vector<16x128xf32>, vector<128x128xf32>, vector<16x128xf32> -> vector<16x128xf32>
    %c0_10 = arith.constant 0 : index
    %c0_11 = arith.constant 0 : index
    %15 = vector.load %arg5[%c0_10, %c0_11] : memref<1x128xf32, #tpu.memory_space<vmem>>, vector<1x128xf32>
    %16 = vector.broadcast %15 : vector<1x128xf32> to vector<16x128xf32>
    %17 = arith.addf %14, %16 : vector<16x128xf32>
    %cst_12 = arith.constant 0.000000e+00 : f32
    %18 = vector.broadcast %cst_12 : f32 to vector<16x128xf32>
    %19 = arith.cmpf oge, %17, %18 : vector<16x128xf32>
    %cst_13 = arith.constant 0.00999999977 : f32
    %20 = vector.broadcast %cst_13 : f32 to vector<16x128xf32>
    %21 = arith.mulf %20, %17 : vector<16x128xf32>
    %22 = arith.select %19, %17, %21 : vector<16x128xi1>, vector<16x128xf32>
    %c0_14 = arith.constant 0 : index
    %c0_15 = arith.constant 0 : index
    %23 = vector.load %arg6[%c0_14, %c0_15] : memref<128x128xf32, #tpu.memory_space<vmem>>, vector<128x128xf32>
    %cst_16 = arith.constant dense<0.000000e+00> : vector<16x128xf32>
    %24 = tpu.matmul %12, %23, %cst_16 {dimension_numbers = #tpu.dot_dimension_numbers<[1], [0], [0], [1], [0, 0, 1, 1], [], []>} : vector<16x128xf32>, vector<128x128xf32>, vector<16x128xf32> -> vector<16x128xf32>
    %c0_17 = arith.constant 0 : index
    %c0_18 = arith.constant 0 : index
    %25 = vector.load %arg7[%c0_17, %c0_18] : memref<1x128xf32, #tpu.memory_space<vmem>>, vector<1x128xf32>
    %26 = vector.broadcast %25 : vector<1x128xf32> to vector<16x128xf32>
    %27 = arith.addf %24, %26 : vector<16x128xf32>
    %cst_19 = arith.constant 0.000000e+00 : f32
    %28 = vector.broadcast %cst_19 : f32 to vector<16x128xf32>
    %29 = arith.cmpf oge, %27, %28 : vector<16x128xf32>
    %cst_20 = arith.constant 0.00999999977 : f32
    %30 = vector.broadcast %cst_20 : f32 to vector<16x128xf32>
    %31 = arith.mulf %30, %27 : vector<16x128xf32>
    %32 = arith.select %29, %27, %31 : vector<16x128xi1>, vector<16x128xf32>
    %c0_21 = arith.constant 0 : index
    %c0_22 = arith.constant 0 : index
    %33 = vector.load %arg8[%c0_21, %c0_22] : memref<128x128xf32, #tpu.memory_space<vmem>>, vector<128x128xf32>
    %cst_23 = arith.constant dense<0.000000e+00> : vector<16x128xf32>
    %34 = tpu.matmul %32, %33, %cst_23 {dimension_numbers = #tpu.dot_dimension_numbers<[1], [0], [0], [1], [0, 0, 1, 1], [], []>} : vector<16x128xf32>, vector<128x128xf32>, vector<16x128xf32> -> vector<16x128xf32>
    %c0_24 = arith.constant 0 : index
    %c0_25 = arith.constant 0 : index
    %35 = vector.load %arg9[%c0_24, %c0_25] : memref<1x128xf32, #tpu.memory_space<vmem>>, vector<1x128xf32>
    %36 = vector.broadcast %35 : vector<1x128xf32> to vector<16x128xf32>
    %37 = arith.addf %34, %36 : vector<16x128xf32>
    %38 = arith.addf %22, %37 : vector<16x128xf32>
    %c0_26 = arith.constant 0 : index
    %c0_27 = arith.constant 0 : index
    %39 = vector.load %arg10[%c0_26, %c0_27] : memref<16x128xf32, #tpu.memory_space<vmem>>, vector<16x128xf32>
    tpu.vector_store %arg10[%c0_26, %c0_27], %38 {strides = array<i32>} : memref<16x128xf32, #tpu.memory_space<vmem>>, vector<16x128xf32>,
    return
  }
  func.func @transform_0(%arg0: i32) -> (i32, i32) {
    %c0_i32 = arith.constant 0 : i32
    %c0_i32_0 = arith.constant 0 : i32
    return %arg0, %c0_i32 : i32, i32
  }
  func.func @transform_1(%arg0: i32) -> (i32, i32) {
    %c0_i32 = arith.constant 0 : i32
    %c0_i32_0 = arith.constant 0 : i32
    %c0_i32_1 = arith.constant 0 : i32
    return %c0_i32, %c0_i32_0 : i32, i32
  }
  func.func @transform_2(%arg0: i32) -> (i32, i32) {
    %c0_i32 = arith.constant 0 : i32
    %c0_i32_0 = arith.constant 0 : i32
    %c0_i32_1 = arith.constant 0 : i32
    return %c0_i32, %c0_i32_0 : i32, i32
  }
  func.func @transform_3(%arg0: i32) -> (i32, i32) {
    %c0_i32 = arith.constant 0 : i32
    %c0_i32_0 = arith.constant 0 : i32
    %c0_i32_1 = arith.constant 0 : i32
    return %c0_i32, %c0_i32_0 : i32, i32
  }
  func.func @transform_4(%arg0: i32) -> (i32, i32) {
    %c0_i32 = arith.constant 0 : i32
    %c0_i32_0 = arith.constant 0 : i32
    %c0_i32_1 = arith.constant 0 : i32
    return %c0_i32, %c0_i32_0 : i32, i32
  }
  func.func @transform_5(%arg0: i32) -> (i32, i32) {
    %c0_i32 = arith.constant 0 : i32
    %c0_i32_0 = arith.constant 0 : i32
    %c0_i32_1 = arith.constant 0 : i32
    return %c0_i32, %c0_i32_0 : i32, i32
  }
  func.func @transform_6(%arg0: i32) -> (i32, i32) {
    %c0_i32 = arith.constant 0 : i32
    %c0_i32_0 = arith.constant 0 : i32
    %c0_i32_1 = arith.constant 0 : i32
    return %c0_i32, %c0_i32_0 : i32, i32
  }
  func.func @transform_7(%arg0: i32) -> (i32, i32) {
    %c0_i32 = arith.constant 0 : i32
    %c0_i32_0 = arith.constant 0 : i32
    %c0_i32_1 = arith.constant 0 : i32
    return %c0_i32, %c0_i32_0 : i32, i32
  }
  func.func @transform_8(%arg0: i32) -> (i32, i32) {
    %c0_i32 = arith.constant 0 : i32
    %c0_i32_0 = arith.constant 0 : i32
    %c0_i32_1 = arith.constant 0 : i32
    return %c0_i32, %c0_i32_0 : i32, i32
  }
  func.func @transform_9(%arg0: i32) -> (i32, i32) {
    %c0_i32 = arith.constant 0 : i32
    %c0_i32_0 = arith.constant 0 : i32
    return %arg0, %c0_i32 : i32, i32
  }
}

</mosaic_0001>

<bundles_post_ra>
// kernel: tpu_custom_call.1
= control target key start
LH: loop header
LB: loop body
LE: loop exit
PB: predicated region body
PF: predicated region fallthrough
CT: control target
= control target key end

     0   :  { %14 = vsyncpa [#allocation3], 0  ;;  %s1168_s0 = inlined_call_operand.hbm [shape: f32[16,128], index: 0, kind: input, shape index: {}]   ;;  %s1169_s1 = inlined_call_operand.hbm [shape: f32[128,256], index: 1, kind: input, shape index: {}]   ;;  %s1170_s2 = inlined_call_operand.vmem [shape: f32[1,256], index: 2, kind: input, shape index: {}]   ;;  %s1171_s3 = inlined_call_operand.hbm [shape: f32[128,128], index: 3, kind: input, shape index: {}]   ;;  %s1172_s4 = inlined_call_operand.vmem [shape: f32[1,128], index: 4, kind: input, shape index: {}]   ;;  %s1173_s5 = inlined_call_operand.hbm [shape: f32[128,128], index: 5, kind: input, shape index: {}]   ;;  %s1174_s6 = inlined_call_operand.vmem [shape: f32[1,128], index: 6, kind: input, shape index: {}]   ;;  %s1175_s7 = inlined_call_operand.hbm [shape: f32[128,128], index: 7, kind: input, shape index: {}]   ;;  %s1176_s8 = inlined_call_operand.vmem [shape: f32[1,128], index: 8, kind: input, shape index: {}]   ;;  %s1177_s9 = inlined_call_operand.hbm [shape: f32[16,128], index: 9, kind: output, shape index: {}]  }
   0x1   :  { %15 = vsyncpa [#allocation6], 0 }
   0x2   :  { %16 = vsyncpa [#allocation9], 0 }
   0x3   :  { %17 = vsyncpa [#allocation4], 0  ;;  %s1006_s30 = smov [#allocation5]   ;;  %s866_s13 = scalar_lea.hbm %s1169_s1, 4096 }
   0x4   :  { %s35_s10 = sshll.u32 %s1006_s30, 4  ;;  %p867_p0 = scmp.ne.s32.totalorder %s1169_s1, %s866_s13  ;;  %s36_s10 = int_to_ptr.vmem [resolvable:$true] %s35_s10 }
   0x5   :  { %p870_p1 = scmp.lt.u32.totalorder %s866_s13, %s1169_s1 }
   0x7   :  { %p872_p2 = pnand %p870_p1, %p867_p0 }
   0x9   :  { %875 = shalt.err (!%p872_p2)
}
   0xa   :  { %s876_s18 = scalar_lea.vmem %s36_s10, 4096  ;;  %p881_p4 = scmp.lt.s32.totalorder %s36_s10, %s36_s10 }
   0xb   :  { %p877_p3 = scmp.ne.s32.totalorder %s36_s10, %s876_s18  ;;  %p882_p5 = scmp.lt.s32.totalorder %s876_s18, %s876_s18 }
   0xd   :  { %p883_p6 = por %p882_p5, %p881_p4 }
   0xf   :  { %p884_p7 = pnand %p883_p6, %p877_p3 }
  0x11   :  { %887 = shalt.err (!%p884_p7)
}
  0x12   :  { %s1007_s19 = smov 256   ;;  %s1008_s20 = smov 16  }
  0x13   :  { %41 = dma.hbm_to_vmem [thread:$0]  %s1169_s1, 4096, %s36_s10, [#allocation6], %s1007_s19, %s1007_s19, %s1008_s20  }
  0x14   :  { %s1009_s23 = smov [#allocation8]   ;;  %s1010_s25 = smov [#allocation2]  }
  0x15   :  { %s63_s24 = sshll.u32 %s1009_s23, 4  ;;  %s23_s26 = sshll.u32 %s1010_s25, 4  ;;  %s64_s24 = int_to_ptr.vmem [resolvable:$true] %s63_s24  ;;  %s24_s26 = int_to_ptr.vmem [resolvable:$true] %s23_s26 }
  0x16   :  { %s888_s29 = scalar_lea.hbm %s1173_s5, 2048 }
  0x17   :  { %p889_p8 = scmp.ne.s32.totalorder %s1173_s5, %s888_s29  ;;  %p892_p9 = scmp.lt.u32.totalorder %s888_s29, %s1173_s5 }
  0x19   :  { %p894_p10 = pnand %p892_p9, %p889_p8 }
  0x1b   :  { %897 = shalt.err (!%p894_p10)
}
  0x1c   :  { %s898_s1 = scalar_lea.vmem %s64_s24, 2048  ;;  %p903_p12 = scmp.lt.s32.totalorder %s64_s24, %s64_s24 }
  0x1d   :  { %p899_p11 = scmp.ne.s32.totalorder %s64_s24, %s898_s1  ;;  %p904_p13 = scmp.lt.s32.totalorder %s898_s1, %s898_s1 }
  0x1f   :  { %p905_p0 = por %p904_p13, %p903_p12 }
  0x21   :  { %p906_p1 = pnand %p905_p0, %p899_p11 }
  0x23   :  { %909 = shalt.err (!%p906_p1)
}
  0x24   :  { %s1011_s10 = smov 128   ;;  %s1012_s14 = smov 8  }
  0x25   :  { %69 = dma.hbm_to_vmem [thread:$0]  %s1173_s5, 2048, %s64_s24, [#allocation9], %s1011_s10, %s1011_s10, %s1012_s14  }
  0x26   :  { %s910_s19 = scalar_lea.hbm %s1168_s0, 256 }
  0x27   :  { %p911_p2 = scmp.ne.s32.totalorder %s1168_s0, %s910_s19  ;;  %p914_p3 = scmp.lt.u32.totalorder %s910_s19, %s1168_s0 }
  0x29   :  { %p916_p4 = pnand %p914_p3, %p911_p2 }
  0x2b   :  { %919 = shalt.err (!%p916_p4)
}
  0x2c   :  { %s920_s25 = scalar_lea.vmem %s24_s26, 256  ;;  %p925_p6 = scmp.lt.s32.totalorder %s24_s26, %s24_s26 }
  0x2d   :  { %p921_p5 = scmp.ne.s32.totalorder %s24_s26, %s920_s25  ;;  %p926_p7 = scmp.lt.s32.totalorder %s920_s25, %s920_s25 }
  0x2f   :  { %p927_p8 = por %p926_p7, %p925_p6 }
  0x31   :  { %p928_p9 = pnand %p927_p8, %p921_p5 }
  0x33   :  { %931 = shalt.err (!%p928_p9)
}
  0x34   :  { %29 = dma.hbm_to_vmem [thread:$0]  %s1168_s0, 256, %s24_s26, [#allocation3], %s1011_s10, %s1011_s10, %s1012_s14  }
  0x35   :  { %s1013_s27 = smov [#allocation7]   ;;  %s1014_s29 = smov [#allocation10]  }
  0x36   :  { %s49_s28 = sshll.u32 %s1013_s27, 4  ;;  %s77_s30 = sshll.u32 %s1014_s29, 4  ;;  %s50_s28 = int_to_ptr.vmem [resolvable:$true] %s49_s28  ;;  %s78_s30 = int_to_ptr.vmem [resolvable:$true] %s77_s30 }
  0x37   :  { %s932_s13 = scalar_lea.hbm %s1171_s3, 2048 }
  0x38   :  { %p933_p10 = scmp.ne.s32.totalorder %s1171_s3, %s932_s13  ;;  %p936_p11 = scmp.lt.u32.totalorder %s932_s13, %s1171_s3 }
  0x3a   :  { %p938_p12 = pnand %p936_p11, %p933_p10 }
  0x3c   :  { %941 = shalt.err (!%p938_p12)
}
  0x3d   :  { %s942_s0 = scalar_lea.vmem %s50_s28, 2048  ;;  %p947_p0 = scmp.lt.s32.totalorder %s50_s28, %s50_s28 }
  0x3e   :  { %p943_p13 = scmp.ne.s32.totalorder %s50_s28, %s942_s0  ;;  %p948_p1 = scmp.lt.s32.totalorder %s942_s0, %s942_s0 }
  0x40   :  { %p949_p2 = por %p948_p1, %p947_p0 }
  0x42   :  { %p950_p3 = pnand %p949_p2, %p943_p13 }
  0x44   :  { %953 = shalt.err (!%p950_p3)
}
  0x45   :  { %55 = dma.hbm_to_vmem [thread:$0]  %s1171_s3, 2048, %s50_s28, [#allocation6], %s1011_s10, %s1011_s10, %s1012_s14  }
  0x46   :  { %s954_s21 = scalar_lea.hbm %s1175_s7, 2048 }
  0x47   :  { %p955_p4 = scmp.ne.s32.totalorder %s1175_s7, %s954_s21  ;;  %p958_p5 = scmp.lt.u32.totalorder %s954_s21, %s1175_s7 }
  0x49   :  { %p960_p6 = pnand %p958_p5, %p955_p4 }
  0x4b   :  { %963 = shalt.err (!%p960_p6)
}
  0x4c   :  { %s964_s24 = scalar_lea.vmem %s78_s30, 2048  ;;  %p969_p8 = scmp.lt.s32.totalorder %s78_s30, %s78_s30 }
  0x4d   :  { %p965_p7 = scmp.ne.s32.totalorder %s78_s30, %s964_s24  ;;  %p970_p9 = scmp.lt.s32.totalorder %s964_s24, %s964_s24 }
  0x4f   :  { %p971_p10 = por %p970_p9, %p969_p8 }
  0x51   :  { %p972_p11 = pnand %p971_p10, %p965_p7 }
  0x53   :  { %975 = shalt.err (!%p972_p11)
}
  0x54   :  { %83 = dma.hbm_to_vmem [thread:$0]  %s1175_s7, 2048, %s78_s30, [#allocation9], %s1011_s10, %s1011_s10, %s1012_s14  }
  0x55   :  { %998 = dma.done.wait [#allocation3], 256  }
  0x56   :  { %999 = vsyncadd [#allocation3], 4294967040 }
  0x57   :  { %1000 = dma.done.wait [#allocation6], 6144  }
  0x58   :  { %1001 = vsyncadd [#allocation6], 4294961152 }
  0x59   :  { %1002 = dma.done.wait [#allocation9], 4096  }
  0x5a   :  { %1003 = vsyncadd [#allocation9], 4294963200  ;;  %v1015_v0 = vmov 0.0   ;;  %v104_v1 = vld [vmem:[#allocation5 + $0x8] sm:$0xff]  ;;  %v106_v2 = vld [vmem:[#allocation5 + $0x18] sm:$0xff]  ;;  %s1016_s13 = smov [#allocation11]  }
  0x5b   :  { %211 = vmatprep.mubr.f32.mxu0 %v1015_v0  ;;  %v103_v3 = vld [vmem:[#allocation5] sm:$0xff]  ;;  %v727_v4 = vpack.c.bf16 %v106_v2, %v104_v1  ;;  %v105_v5 = vld [vmem:[#allocation5 + $0x10] sm:$0xff]  ;;  %v108_v6 = vld [vmem:[#allocation5 + $0x28] sm:$0xff]  ;;  %s551_s1 = sshll.u32 %s1016_s13, 4  ;;  %s552_s1 = int_to_ptr.vmem [resolvable:$true] %s551_s1 }
  0x5c   :  { %v110_v7 = vld [vmem:[#allocation5 + $0x38] sm:$0xff]  ;;  %v729_v8 = vpack.c.bf16 %v105_v5, %v103_v3  ;;  %v107_v10 = vld [vmem:[#allocation5 + $0x20] sm:$0xff]  ;;  %v109_v11 = vld [vmem:[#allocation5 + $0x30] sm:$0xff]  ;;  %p981_p13 = scmp.lt.s32.totalorder %s552_s1, %s552_s1 }
  0x5d   :  { %v731_v9 = vpack.c.bf16 %v110_v7, %v108_v6  ;;  %v112_v12 = vld [vmem:[#allocation5 + $0x48] sm:$0xff]  ;;  %728 = vmatprep.subr.bf16.mxu0 %v727_v4  ;;  %v114_v13 = vld [vmem:[#allocation5 + $0x58] sm:$0xff]  ;;  %v733_v14 = vpack.c.bf16 %v109_v11, %v107_v10  ;;  %v111_v16 = vld [vmem:[#allocation5 + $0x40] sm:$0xff] }
  0x5e   :  { %730 = vmatpush1.bf16.msra.mxu0 %v729_v8  ;;  %v735_v15 = vpack.c.bf16 %v114_v13, %v112_v12  ;;  %v113_v17 = vld [vmem:[#allocation5 + $0x50] sm:$0xff]  ;;  %v116_v18 = vld [vmem:[#allocation5 + $0x68] sm:$0xff]  ;;  %v118_v19 = vld [vmem:[#allocation5 + $0x78] sm:$0xff] }
  0x5f   :  { %732 = vmatprep.subr.bf16.mxu0 %v731_v9  ;;  %v737_v20 = vpack.c.bf16 %v113_v17, %v111_v16  ;;  %v739_v21 = vpack.c.bf16 %v118_v19, %v116_v18  ;;  %v115_v22 = vld [vmem:[#allocation5 + $0x60] sm:$0xff]  ;;  %v117_v23 = vld [vmem:[#allocation5 + $0x70] sm:$0xff]  ;;  %v120_v24 = vld [vmem:[#allocation5 + $0x88] sm:$0xff] }
  0x60   :  { %v122_v25 = vld [vmem:[#allocation5 + $0x98] sm:$0xff]  ;;  %v236_v26 = vld [vmem:[#allocation7] sm:$0xff]  ;;  %v237_v27 = vld [vmem:[#allocation7 + $0x8] sm:$0xff]  ;;  %v741_v28 = vpack.c.bf16 %v117_v23, %v115_v22 }
  0x61   :  { %v119_v29 = vld [vmem:[#allocation5 + $0x80] sm:$0xff]  ;;  %v759_v30 = vpack.c.bf16 %v237_v27, %v236_v26  ;;  %v238_v31 = vld [vmem:[#allocation7 + $0x10] sm:$0xff]  ;;  %v743_v32 = vpack.c.bf16 %v122_v25, %v120_v24  ;;  %v124_v34 = vld [vmem:[#allocation5 + $0xa8] sm:$0xff] }
  0x62   :  { %734 = vmatpush1.bf16.msra.mxu0 %v733_v14  ;;  %v121_v33 = vld [vmem:[#allocation5 + $0x90] sm:$0xff]  ;;  %v239_v35 = vld [vmem:[#allocation7 + $0x18] sm:$0xff]  ;;  %v240_v38 = vld [vmem:[#allocation7 + $0x20] sm:$0xff] }
  0x63   :  { %736 = vmatprep.subr.bf16.mxu0 %v735_v15  ;;  %v126_v36 = vld [vmem:[#allocation5 + $0xb8] sm:$0xff]  ;;  %760 = vmatprep.subr.bf16.mxu1 %v759_v30  ;;  %v763_v37 = vpack.c.bf16 %v239_v35, %v238_v31  ;;  %v241_v39 = vld [vmem:[#allocation7 + $0x28] sm:$0xff]  ;;  %v745_v40 = vpack.c.bf16 %v121_v33, %v119_v29  ;;  %v123_v41 = vld [vmem:[#allocation5 + $0xa0] sm:$0xff] }
  0x64   :  { %762 = vmatpush3.bf16.msra.mxu1 %v759_v30  ;;  %v767_v42 = vpack.c.bf16 %v241_v39, %v240_v38  ;;  %v747_v43 = vpack.c.bf16 %v126_v36, %v124_v34  ;;  %v125_v44 = vld [vmem:[#allocation5 + $0xb0] sm:$0xff]  ;;  %v243_v46 = vld [vmem:[#allocation7 + $0x38] sm:$0xff]  ;;  %v128_v47 = vld [vmem:[#allocation5 + $0xc8] sm:$0xff]  ;;  %v137_v38 = vlaneseq }
  0x65   :  { %764 = vmatprep.subr.bf16.mxu1 %v763_v37  ;;  %v242_v45 = vld [vmem:[#allocation7 + $0x30] sm:$0xff]  ;;  %v130_v48 = vld [vmem:[#allocation5 + $0xd8] sm:$0xff]  ;;  %v749_v49 = vpack.c.bf16 %v125_v44, %v123_v41  ;;  %v127_v50 = vld [vmem:[#allocation5 + $0xc0] sm:$0xff] }
  0x66   :  { %738 = vmatpush1.bf16.msra.mxu0 %v737_v20  ;;  %v771_v51 = vpack.c.bf16 %v243_v46, %v242_v45  ;;  %v751_v52 = vpack.c.bf16 %v130_v48, %v128_v47  ;;  %v129_v53 = vld [vmem:[#allocation5 + $0xd0] sm:$0xff]  ;;  %v244_v54 = vld [vmem:[#allocation7 + $0x40] sm:$0xff]  ;;  %v245_v55 = vld [vmem:[#allocation7 + $0x48] sm:$0xff]  ;;  %v138_v39 = vshrl.u32 %v137_v38, 7 }
  0x67   :  { %740 = vmatprep.subr.bf16.mxu0 %v739_v21  ;;  %v132_v56 = vld [vmem:[#allocation5 + $0xe8] sm:$0xff]  ;;  %v134_v57 = vld [vmem:[#allocation5 + $0xf8] sm:$0xff]  ;;  %v753_v58 = vpack.c.bf16 %v129_v53, %v127_v50  ;;  %v131_v59 = vld [vmem:[#allocation5 + $0xe0] sm:$0xff]  ;;  %v775_v60 = vpack.c.bf16 %v245_v55, %v244_v54 }
  0x68   :  { %766 = vmatpush3.bf16.msra.mxu1 %v763_v37  ;;  %v755_v61 = vpack.c.bf16 %v134_v57, %v132_v56  ;;  %v133_v62 = vld [vmem:[#allocation5 + $0xf0] sm:$0xff]  ;;  %v247_v1 = vld [vmem:[#allocation7 + $0x58] sm:$0xff]  ;;  %v340_v2 = vld [vmem:[#allocation8] sm:$0xff] }
  0x69   :  { %768 = vmatprep.subr.bf16.mxu1 %v767_v42  ;;  %v246_v63 = vld [vmem:[#allocation7 + $0x50] sm:$0xff]  ;;  %v341_v3 = vld [vmem:[#allocation8 + $0x8] sm:$0xff]  ;;  %v757_v4 = vpack.c.bf16 %v133_v62, %v131_v59  ;;  %v343_v8 = vld [vmem:[#allocation8 + $0x18] sm:$0xff] }
  0x6a   :  { %742 = vmatpush1.bf16.msra.mxu0 %v741_v28  ;;  %v779_v5 = vpack.c.bf16 %v247_v1, %v246_v63  ;;  %v791_v6 = vpack.c.bf16 %v341_v3, %v340_v2  ;;  %v342_v7 = vld [vmem:[#allocation8 + $0x10] sm:$0xff]  ;;  %v344_v11 = vld [vmem:[#allocation8 + $0x20] sm:$0xff]  ;;  %v345_v12 = vld [vmem:[#allocation8 + $0x28] sm:$0xff] }
  0x6b   :  { %744 = vmatprep.subr.bf16.mxu0 %v743_v32  ;;  %v101_v9 = vld [vmem:[#allocation2] sm:$0xff]  ;;  %v795_v10 = vpack.c.bf16 %v343_v8, %v342_v7  ;;  %v102_v13 = vld [vmem:[#allocation2 + $0x8] sm:$0xff]  ;;  %v799_v14 = vpack.c.bf16 %v345_v12, %v344_v11  ;;  %v348_v18 = vld [vmem:[#allocation8 + $0x40] sm:$0xff] }
  0x6c   :  { %770 = vmatpush3.bf16.msra.mxu1 %v767_v42  ;;  %v346_v15 = vld [vmem:[#allocation8 + $0x30] sm:$0xff]  ;;  %v347_v16 = vld [vmem:[#allocation8 + $0x38] sm:$0xff]  ;;  %v349_v19 = vld [vmem:[#allocation8 + $0x48] sm:$0xff]  ;;  %v143_v42 = vsub.s32 1, %v138_v39 }
  0x6d   :  { %772 = vmatprep.subr.bf16.mxu1 %v771_v51  ;;  %v803_v17 = vpack.c.bf16 %v347_v16, %v346_v15  ;;  %v807_v20 = vpack.c.bf16 %v349_v19, %v348_v18  ;;  %v350_v21 = vld [vmem:[#allocation8 + $0x50] sm:$0xff]  ;;  %v351_v22 = vld [vmem:[#allocation8 + $0x58] sm:$0xff]  ;;  %v248_v23 = vld [vmem:[#allocation7 + $0x60] sm:$0xff] }
  0x6e   :  { %746 = vmatpush1.bf16.msra.mxu0 %v745_v40  ;;  %v249_v24 = vld [vmem:[#allocation7 + $0x68] sm:$0xff]  ;;  %v352_v26 = vld [vmem:[#allocation8 + $0x60] sm:$0xff]  ;;  %v250_v29 = vld [vmem:[#allocation7 + $0x70] sm:$0xff]  ;;  %v139_v40 = vsub.s32 0, %v138_v39 }
  0x6f   :  { %748 = vmatprep.subr.bf16.mxu0 %v747_v43  ;;  %v783_v25 = vpack.c.bf16 %v249_v24, %v248_v23  ;;  %v353_v27 = vld [vmem:[#allocation8 + $0x68] sm:$0xff]  ;;  %v251_v30 = vld [vmem:[#allocation7 + $0x78] sm:$0xff]  ;;  %v354_v32 = vld [vmem:[#allocation8 + $0x70] sm:$0xff] }
  0x70   :  { %774 = vmatpush3.bf16.msra.mxu1 %v771_v51  ;;  %v815_v28 = vpack.c.bf16 %v353_v27, %v352_v26  ;;  %v787_v31 = vpack.c.bf16 %v251_v30, %v250_v29  ;;  %v355_v33 = vld [vmem:[#allocation8 + $0x78] sm:$0xff]  ;;  %v444_v35 = vld [vmem:[#allocation10] sm:$0xff]  ;;  %v445_v36 = vld [vmem:[#allocation10 + $0x8] sm:$0xff] }
  0x71   :  { %776 = vmatprep.subr.bf16.mxu1 %v775_v60  ;;  %v819_v34 = vpack.c.bf16 %v355_v33, %v354_v32  ;;  %v823_v37 = vpack.c.bf16 %v445_v36, %v444_v35  ;;  %v135_v41 = vld [vmem:[%s1170_s2] sm:$0x3]  ;;  %v447_v56 = vld [vmem:[#allocation10 + $0x18] sm:$0xff]  ;;  %v448_v63 = vld [vmem:[#allocation10 + $0x20] sm:$0xff] }
  0x72   :  { %750 = vmatpush1.bf16.msra.mxu0 %v749_v49  ;;  %v140_v43 = vrot.slane %v135_v41, %v139_v40  ;;  %v144_v44 = vrot.slane %v135_v41, %v143_v42  ;;  %v446_v55 = vld [vmem:[#allocation10 + $0x10] sm:$0xff]  ;;  %v449_v1 = vld [vmem:[#allocation10 + $0x28] sm:$0xff]  ;;  %v452_v7 = vld [vmem:[#allocation10 + $0x40] sm:$0xff] }
  0x73   :  { %752 = vmatprep.subr.bf16.mxu0 %v751_v52  ;;  %v831_v3 = vpack.c.bf16 %v449_v1, %v448_v63  ;;  %v453_v8 = vld [vmem:[#allocation10 + $0x48] sm:$0xff]  ;;  %v455_v11 = vld [vmem:[#allocation10 + $0x58] sm:$0xff]  ;;  %v458_v16 = vld [vmem:[#allocation10 + $0x70] sm:$0xff] }
  0x74   :  { %778 = vmatpush3.bf16.msra.mxu1 %v775_v60  ;;  %v566_v19 = vld [vmem:[%s1174_s6] ss:$0 sm:$0xff] }
  0x75   :  { %780 = vmatprep.subr.bf16.mxu1 %v779_v5  ;;  %v565_v29 = vld [vmem:[%s1172_s4] ss:$0 sm:$0xff]  ;;  %s976_s4 = scalar_lea.vmem %s552_s1, 256 }
  0x76   :  { %754 = vmatpush1.bf16.msra.mxu0 %v753_v58  ;;  %v567_v33 = vld [vmem:[%s1176_s8] ss:$0 sm:$0xff]  ;;  %p977_p12 = scmp.ne.s32.totalorder %s552_s1, %s976_s4  ;;  %p982_p0 = scmp.lt.s32.totalorder %s976_s4, %s976_s4 }
  0x77   :  { %756 = vmatprep.subr.bf16.mxu0 %v755_v61  ;;  %v827_v61 = vpack.c.bf16 %v447_v56, %v446_v55 }
  0x78   :  { %782 = vmatpush3.bf16.msra.mxu1 %v779_v5  ;;  %v451_v5 = vld [vmem:[#allocation10 + $0x38] sm:$0xff]  ;;  %p983_p1 = por %p982_p0, %p981_p13 }
  0x79   :  { %784 = vmatprep.subr.bf16.mxu1 %v783_v25 }
  0x7a   :  { %758 = vmatpush1.bf16.msra.mxu0 %v757_v4  ;;  %v450_v4 = vld [vmem:[#allocation10 + $0x30] sm:$0xff]  ;;  %p984_p2 = pnand %p983_p1, %p977_p12 }
  0x7b   :  { %792 = vmatprep.subr.bf16.mxu0 %v791_v6 }
  0x7c   :  { %786 = vmatpush3.bf16.msra.mxu1 %v783_v25 }
  0x7d   :  { %212 = vmatmul.mubr.f32.vlgmr.msra.gmra.mrb[0].mxu0 %v101_v9  ;;  %788 = vmatprep.subr.bf16.mxu1 %v787_v31  ;;  %v839_v9 = vpack.c.bf16 %v453_v8, %v452_v7 }
  0x7e   :  { %217 = vmatprep.mubr.f32.mxu0 %v1015_v0  ;;  %794 = vmatpush3.bf16.msra.mxu0 %v791_v6  ;;  %v811_v0 = vpack.c.bf16 %v351_v22, %v350_v21  ;;  %v835_v6 = vpack.c.bf16 %v451_v5, %v450_v4 }
  0x7f   :  { %796 = vmatprep.subr.bf16.mxu0 %v795_v10 }
  0x80   :  { %790 = vmatpush3.bf16.msra.mxu1 %v787_v31 }
  0x81   :  { %218 = vmatmul.mubr.f32.gmra.mrb[2].mxu0 %v102_v13  ;;  %824 = vmatprep.subr.bf16.mxu1 %v823_v37  ;;  %v456_v13 = vld [vmem:[#allocation10 + $0x60] sm:$0xff] }
  0x82   :  { %798 = vmatpush3.bf16.msra.mxu0 %v795_v10  ;;  %v454_v10 = vld [vmem:[#allocation10 + $0x50] sm:$0xff] }
  0x83   :  { %800 = vmatprep.subr.bf16.mxu0 %v799_v14  ;;  %v843_v12 = vpack.c.bf16 %v455_v11, %v454_v10 }
  0x86   :  { %802 = vmatpush3.bf16.msra.mxu0 %v799_v14  ;;  %v457_v14 = vld [vmem:[#allocation10 + $0x68] sm:$0xff] }
  0x87   :  { %804 = vmatprep.subr.bf16.mxu0 %v803_v17  ;;  %v847_v15 = vpack.c.bf16 %v457_v14, %v456_v13 }
  0x8a   :  { %806 = vmatpush3.bf16.msra.mxu0 %v803_v17  ;;  %v459_v17 = vld [vmem:[#allocation10 + $0x78] sm:$0xff] }
  0x8b   :  { %808 = vmatprep.subr.bf16.mxu0 %v807_v20  ;;  %v851_v18 = vpack.c.bf16 %v459_v17, %v458_v16 }
  0x8e   :  { %810 = vmatpush3.bf16.msra.mxu0 %v807_v20 }
  0x8f   :  { %812 = vmatprep.subr.bf16.mxu0 %v811_v0 }
  0x92   :  { %814 = vmatpush3.bf16.msra.mxu0 %v811_v0 }
  0x93   :  { %816 = vmatprep.subr.bf16.mxu0 %v815_v28 }
  0x96   :  { %818 = vmatpush3.bf16.msra.mxu0 %v815_v28 }
  0x97   :  { %820 = vmatprep.subr.bf16.mxu0 %v819_v34 }
  0x9a   :  { %822 = vmatpush3.bf16.msra.mxu0 %v819_v34 }
 0x150   :  { %v213_v45 = vpop.f32.mrb[0].mxu0 }
 0x151   :  { %v214_v46 = vadd.f32 %v213_v45, %v140_v43  ;;  %v215_v47 = vpop.f32.mrb[1].mxu0 }
 0x152   :  { %v216_v48 = vadd.f32 %v215_v47, %v144_v44 }
 0x153   :  { %vm224_vm0 = vcmp.ge.f32.partialorder %v214_v46, 0.0  ;;  %v228_v49 = vmul.f32 0.01, %v214_v46 }
 0x154   :  { %v229_v50 = vmul.f32 0.01, %v216_v48  ;;  %v219_v51 = vpop.f32.mrb[2].mxu0  ;;  %vm225_vm1 = vcmp.ge.f32.partialorder %v216_v48, 0.0 }
 0x155   :  { %v220_v52 = vadd.f32 %v219_v51, %v140_v43  ;;  %v221_v53 = vpop.f32.mrb[3].mxu0  ;;  %v232_v54 = vsel %vm224_vm0, %v214_v46, %v228_v49 }
 0x156   :  { %v222_v57 = vadd.f32 %v221_v53, %v144_v44  ;;  %654 = vmatprep.mubr.f32.mxu1 %v232_v54  ;;  %v233_v58 = vsel %vm225_vm1, %v216_v48, %v229_v50 }
 0x157   :  { %v230_v59 = vmul.f32 0.01, %v220_v52  ;;  %689 = vmatprep.mubr.f32.mxu0 %v233_v58  ;;  %vm226_vm2 = vcmp.ge.f32.partialorder %v220_v52, 0.0 }
 0x158   :  { %vm227_vm3 = vcmp.ge.f32.partialorder %v222_v57, 0.0  ;;  %v231_v60 = vmul.f32 0.01, %v222_v57 }
 0x159   :  { %v234_v62 = vsel %vm226_vm2, %v220_v52, %v230_v59 }
 0x15a   :  { %v235_v2 = vsel %vm227_vm3, %v222_v57, %v231_v60  ;;  %655 = vmatmul.mubr.f32.vlgmr.msra.gmra.mrb[0].mxu1 %v234_v62 }
 0x15b   :  { %690 = vmatmul.mubr.f32.vlgmr.msra.gmra.mrb[4].mxu0 %v235_v2  ;;  %826 = vmatpush3.bf16.msra.mxu1 %v823_v37 }
 0x15c   :  { %828 = vmatprep.subr.bf16.mxu1 %v827_v61 }
 0x15f   :  { %830 = vmatpush3.bf16.msra.mxu1 %v827_v61 }
 0x160   :  { %832 = vmatprep.subr.bf16.mxu1 %v831_v3 }
 0x163   :  { %834 = vmatpush3.bf16.msra.mxu1 %v831_v3 }
 0x164   :  { %836 = vmatprep.subr.bf16.mxu1 %v835_v6 }
 0x167   :  { %838 = vmatpush3.bf16.msra.mxu1 %v835_v6 }
 0x168   :  { %840 = vmatprep.subr.bf16.mxu1 %v839_v9 }
 0x16b   :  { %842 = vmatpush3.bf16.msra.mxu1 %v839_v9 }
 0x16c   :  { %844 = vmatprep.subr.bf16.mxu1 %v843_v12 }
 0x16f   :  { %846 = vmatpush3.bf16.msra.mxu1 %v843_v12 }
 0x170   :  { %848 = vmatprep.subr.bf16.mxu1 %v847_v15 }
 0x173   :  { %850 = vmatpush3.bf16.msra.mxu1 %v847_v15 }
 0x174   :  { %852 = vmatprep.subr.bf16.mxu1 %v851_v18 }
 0x177   :  { %854 = vmatpush3.bf16.msra.mxu1 %v851_v18 }
 0x22d   :  { %v656_v20 = vpop.f32.mrb[0].mxu1 }
 0x22e   :  { %v325_v21 = vpop.f32.mrb[1].mxu1  ;;  %v691_v22 = vpop.f32.mrb[4].mxu0  ;;  %v331_v30 = vadd.f32 %v656_v20, %v565_v29 }
 0x22f   :  { %v435_v0 = vadd.f32 %v691_v22, %v566_v19  ;;  %v429_v23 = vpop.f32.mrb[5].mxu0  ;;  %v326_v31 = vadd.f32 %v565_v29, %v325_v21 }
 0x230   :  { %v430_v24 = vadd.f32 %v566_v19, %v429_v23  ;;  %v337_v32 = vmul.f32 0.01, %v331_v30  ;;  %vm335_vm6 = vcmp.ge.f32.partialorder %v331_v30, 0.0 }
 0x231   :  { %v441_v25 = vmul.f32 0.01, %v435_v0  ;;  %vm439_vm4 = vcmp.ge.f32.partialorder %v435_v0, 0.0  ;;  %v336_v34 = vmul.f32 0.01, %v326_v31  ;;  %vm334_vm7 = vcmp.ge.f32.partialorder %v326_v31, 0.0 }
 0x232   :  { %v440_v26 = vmul.f32 0.01, %v430_v24  ;;  %vm438_vm5 = vcmp.ge.f32.partialorder %v430_v24, 0.0  ;;  %v339_v38 = vsel %vm335_vm6, %v331_v30, %v337_v32 }
 0x233   :  { %v443_v28 = vsel %vm439_vm4, %v435_v0, %v441_v25  ;;  %v338_v41 = vsel %vm334_vm7, %v326_v31, %v336_v34 }
 0x234   :  { %v442_v27 = vsel %vm438_vm5, %v430_v24, %v440_v26 }
 0x235   :  { %724 = vmatprep.mubr.f32.mxu1 %v442_v27 }
 0x236   :  { %725 = vmatmul.mubr.f32.vlgmr.msra.gmra.mrb[2].mxu1 %v443_v28 }
 0x309   :  { %v726_v35 = vpop.f32.mrb[2].mxu1 }
 0x30a   :  { %v539_v36 = vadd.f32 %v726_v35, %v567_v33  ;;  %v533_v37 = vpop.f32.mrb[3].mxu1 }
 0x30b   :  { %v534_v39 = vadd.f32 %v567_v33, %v533_v37 }
 0x30c   :  { %v543_v40 = vadd.f32 %v539_v36, %v339_v38 }
 0x30d   :  { %v542_v42 = vadd.f32 %v534_v39, %v338_v41 }
 0x30e   :  { %545 = vst [vmem:[#allocation11 + $0x8] sm:$0xff] %v543_v40 }
 0x30f   :  { %544 = vst [vmem:[#allocation11] sm:$0xff] %v542_v42 }
 0x310   :  { %987 = shalt.err (!%p984_p2)
}
 0x311   :  { %s988_s16 = scalar_lea.hbm %s1177_s9, 256 }
 0x312   :  { %p989_p3 = scmp.ne.s32.totalorder %s1177_s9, %s988_s16  ;;  %p992_p4 = scmp.lt.u32.totalorder %s988_s16, %s1177_s9 }
 0x314   :  { %p994_p5 = pnand %p992_p4, %p989_p3 }
 0x316   :  { %997 = shalt.err (!%p994_p5)
}
 0x317   :  { %557 = dma.vmem_to_hbm [thread:$0]  %s552_s1, 256, %s1177_s9, [#allocation4], %s1011_s10, %s1011_s10, %s1012_s14  }
 0x318   :  { %1004 = dma.done.wait [#allocation4], 256  }
 0x319   :  { %1005 = vsyncadd [#allocation4], 4294967040 }
 0x31a   :  { %561 = vsyncpa [#allocation3], 1 }
 0x31b   :  { %562 = vsyncpa [#allocation6], 1 }
 0x31c   :  { %563 = vsyncpa [#allocation9], 1 }
 0x31d   :  { %564 = vsyncpa [#allocation4], 1 }

</bundles_post_ra>
